<compile_context>
chip_gen: v7x
topology: tpu7x:2x2x1
jax: 0.10.0
libtpu: 0.0.40
codegen_flags: <defaults>
</compile_context>

<pallas_src>
import functools

import jax
import jax.numpy as jnp
from jax.experimental import pallas as pl
from jax.experimental.pallas import tpu as pltpu


def _round_up(x, m):
    return ((x + m - 1) // m) * m


def _evidential_heads_kernel(x_ref, w_ref, b_ref,
                             gamma_ref, v_ref, alpha_ref, beta_ref,
                             *, compute_dtype):
    # Shared ReLU on the input tile, then one fused matmul for all 4 heads.
    y = jnp.maximum(x_ref[...], jnp.zeros((), x_ref.dtype))
    w = w_ref[...]
    if compute_dtype is not None:
        # bf16 streaming path: cast only the dot operands; accumulate in f32.
        y = y.astype(compute_dtype)
        w = w.astype(compute_dtype)
    acc = jnp.dot(y, w, preferred_element_type=jnp.float32)
    acc = acc + b_ref[...].astype(jnp.float32)

    r = gamma_ref.shape[-1]
    gamma_ref[...] = acc[:, 0 * r:1 * r].astype(gamma_ref.dtype)
    v_ref[...] = acc[:, 1 * r:2 * r].astype(v_ref.dtype)
    alpha_ref[...] = acc[:, 2 * r:3 * r].astype(alpha_ref.dtype)
    beta_ref[...] = acc[:, 3 * r:4 * r].astype(beta_ref.dtype)


def fuse_head_params(w_gamma, b_gamma, w_v, b_v, w_alpha, b_alpha,
                     w_beta, b_beta):
    """One-time (outside the hot path) weight prep.

    PyTorch nn.Linear weights are [out_features, in_features]; transpose each
    head to [in, out] and concatenate along the output axis.
    Returns (w_cat [R, 4R], b_cat [1, 4R]).
    """
    w_cat = jnp.concatenate([w_gamma.T, w_v.T, w_alpha.T, w_beta.T], axis=1)
    b_cat = jnp.concatenate([b_gamma, b_v, b_alpha, b_beta],
                            axis=0).reshape(1, -1)
    return w_cat, b_cat


def context_to_evidential_latent_distribution(x, w_cat, b_cat, *,
                                              block_b=2048,
                                              min_pallas_batch=256,
                                              compute_dtype=None,
                                              out_dtype=None):
    """Equivalent of ContextToEvidentialLatentDistribution.forward.

    x:     [B, R]
    w_cat: [R, 4R]   (pre-fused via fuse_head_params)
    b_cat: [1, 4R]
    returns (gamma, v, alpha, beta), each [B, R]
    """
    B, R = x.shape
    four_r = w_cat.shape[1]
    assert four_r == 4 * R and b_cat.shape == (1, four_r)
    out_dtype = out_dtype if out_dtype is not None else x.dtype

    # ---- Small-B fallback: dispatch cost > work; let XLA fuse everything. ----
    if B < min_pallas_batch:
        y = jnp.maximum(x, jnp.zeros((), x.dtype))
        w = w_cat
        if compute_dtype is not None:
            y = y.astype(compute_dtype)
            w = w.astype(compute_dtype)
        out = (jnp.dot(y, w, preferred_element_type=jnp.float32)
               + b_cat.astype(jnp.float32)).astype(out_dtype)
        return (out[:, 0 * R:1 * R], out[:, 1 * R:2 * R],
                out[:, 2 * R:3 * R], out[:, 3 * R:4 * R])

    # ---- Tile selection -----------------------------------------------------
    # Big tiles amortize the ~0.35us/grid-step overhead; TB is a multiple of 8
    # (sublane) and derived from the step count so the tail tile is not tiny.
    n_steps = pl.cdiv(B, block_b)
    if n_steps == 1 and B >= 2 * max(min_pallas_batch, 8):
        # Give the 'parallel' batch axis >=2 steps so a 2-TC part (v7x) can
        # shard it; harmless on single-TC generations.
        n_steps = 2
    TB = min(_round_up(pl.cdiv(B, n_steps), 8), _round_up(B, 8))
    grid = (pl.cdiv(B, TB),)

    itemsize = jnp.dtype(x.dtype).itemsize
    out_itemsize = jnp.dtype(out_dtype).itemsize
    cost = pl.CostEstimate(
        flops=2 * B * R * four_r,
        transcendentals=0,
        bytes_accessed=(x.size + w_cat.size + b_cat.size) * itemsize
        + B * four_r * out_itemsize,
    )

    kernel = functools.partial(_evidential_heads_kernel,
                               compute_dtype=compute_dtype)
    head_shape = jax.ShapeDtypeStruct((B, R), out_dtype)
    head_spec = pl.BlockSpec((TB, R), lambda i: (i, 0))

    gamma, v_out, alpha, beta = pl.pallas_call(
        kernel,
        out_shape=(head_shape, head_shape, head_shape, head_shape),
        grid=grid,
        in_specs=[
            # x: batch-tiled, double-buffered by the auto-pipeline.
            pl.BlockSpec((TB, R), lambda i: (i, 0)),
            # Fused weights / bias: resident across the whole grid.
            pl.BlockSpec((R, four_r), lambda i: (0, 0)),
            pl.BlockSpec((1, four_r), lambda i: (0, 0)),
        ],
        # Four per-head outputs, written directly from the kernel so no
        # post-kernel slice copies re-touch HBM.
        out_specs=[head_spec, head_spec, head_spec, head_spec],
        compiler_params=pltpu.CompilerParams(
            dimension_semantics=("parallel",),
        ),
        cost_estimate=cost,
    )(x, w_cat, b_cat)

    return gamma, v_out, alpha, beta


if __name__ == "__main__":
    R = 32               # representation_size

    key = jax.random.PRNGKey(0)
    keys = jax.random.split(key, 10)
    bound = 1.0 / (R ** 0.5)

    def make_linear(kw, kb):
        w = jax.random.uniform(kw, (R, R), jnp.float32, -bound, bound)
        b = jax.random.uniform(kb, (R,), jnp.float32, -bound, bound)
        return w, b

    w_gamma, b_gamma = make_linear(keys[1], keys[2])
    w_v, b_v = make_linear(keys[3], keys[4])
    w_alpha, b_alpha = make_linear(keys[5], keys[6])
    w_beta, b_beta = make_linear(keys[7], keys[8])

    # One-time fusion of the 4 heads (keep out of the per-call hot path).
    w_cat, b_cat = fuse_head_params(w_gamma, b_gamma, w_v, b_v,
                                    w_alpha, b_alpha, w_beta, b_beta)

    def reference(x):
        # Same math as the PyTorch module: ReLU then nn.Linear per head.
        y = jnp.maximum(x, 0.0)
        return (y @ w_gamma.T + b_gamma, y @ w_v.T + b_v,
                y @ w_alpha.T + b_alpha, y @ w_beta.T + b_beta)

    def check(outs, refs, atol, rtol):
        for o, r in zip(outs, refs):
            assert o.shape == r.shape
            assert jnp.allclose(o, r, atol=atol, rtol=rtol)

    # 1) Small demo batch (B=8), forced through the Pallas kernel.
    x_small = jax.random.normal(keys[0], (8, R), dtype=jnp.float32)
    outs = context_to_evidential_latent_distribution(
        x_small, w_cat, b_cat, min_pallas_batch=0)
    jax.block_until_ready(outs)
    check(outs, reference(x_small), atol=1e-5, rtol=1e-5)

    # 2) Larger batch exercising a multi-step grid and a padded tail tile.
    x_big = jax.random.normal(keys[9], (2056, R), dtype=jnp.float32)
    outs_big = context_to_evidential_latent_distribution(x_big, w_cat, b_cat)
    jax.block_until_ready(outs_big)
    check(outs_big, reference(x_big), atol=1e-5, rtol=1e-5)

    # 3) Optional bf16 streaming path (f32 accumulation; looser tolerance).
    outs_bf16 = context_to_evidential_latent_distribution(
        x_small, w_cat, b_cat, min_pallas_batch=0,
        compute_dtype=jnp.bfloat16)
    jax.block_until_ready(outs_bf16)
    check(outs_bf16, reference(x_small), atol=3e-2, rtol=3e-2)

    # 4) Small-B XLA fallback (default threshold) matches too.
    outs_fallback = context_to_evidential_latent_distribution(
        x_small, w_cat, b_cat)
    jax.block_until_ready(outs_fallback)
    check(outs_fallback, reference(x_small), atol=1e-5, rtol=1e-5)

    print("KERNEL_OK")
</pallas_src>

<mosaic_0001>
module attributes {stable_mosaic.version = 11 : i64} {
  func.func @_evidential_heads_kernel(%arg0: i32, %arg1: memref<8x32xf32, #tpu.memory_space<vmem>>, %arg2: memref<32x128xf32, #tpu.memory_space<vmem>>, %arg3: memref<1x128xf32, #tpu.memory_space<vmem>>, %arg4: memref<8x32xf32, #tpu.memory_space<vmem>>, %arg5: memref<8x32xf32, #tpu.memory_space<vmem>>, %arg6: memref<8x32xf32, #tpu.memory_space<vmem>>, %arg7: memref<8x32xf32, #tpu.memory_space<vmem>>) attributes {dimension_semantics = [#tpu.dimension_semantics<parallel>], iteration_bounds = array<i64: 1>, scalar_prefetch = 0 : i64, scratch_operands = 0 : i64, tpu.core_type = #tpu.core_type<tc>, window_params = [{transform_indices = @transform_0, window_bounds = array<i64: 8, 32>}, {pipeline_mode = #tpu.pipeline_mode<synchronous>, transform_indices = @transform_1, window_bounds = array<i64: 32, 128>}, {pipeline_mode = #tpu.pipeline_mode<synchronous>, transform_indices = @transform_2, window_bounds = array<i64: 1, 128>}, {transform_indices = @transform_3, window_bounds = array<i64: 8, 32>}, {transform_indices = @transform_4, window_bounds = array<i64: 8, 32>}, {transform_indices = @transform_5, window_bounds = array<i64: 8, 32>}, {transform_indices = @transform_6, window_bounds = array<i64: 8, 32>}]} {
    %c0 = arith.constant 0 : index
    %c0_0 = arith.constant 0 : index
    %0 = vector.load %arg1[%c0, %c0_0] : memref<8x32xf32, #tpu.memory_space<vmem>>, vector<8x32xf32>
    %cst = arith.constant 0.000000e+00 : f32
    %1 = vector.broadcast %cst : f32 to vector<8x32xf32>
    %2 = arith.maximumf %0, %1 : vector<8x32xf32>
    %c0_1 = arith.constant 0 : index
    %c0_2 = arith.constant 0 : index
    %3 = vector.load %arg2[%c0_1, %c0_2] : memref<32x128xf32, #tpu.memory_space<vmem>>, vector<32x128xf32>
    %cst_3 = arith.constant dense<0.000000e+00> : vector<8x128xf32>
    %4 = tpu.matmul %2, %3, %cst_3 {dimension_numbers = #tpu.dot_dimension_numbers<[1], [0], [0], [1], [0, 0, 1, 1], [], []>} : vector<8x32xf32>, vector<32x128xf32>, vector<8x128xf32> -> vector<8x128xf32>
    %c0_4 = arith.constant 0 : index
    %c0_5 = arith.constant 0 : index
    %5 = vector.load %arg3[%c0_4, %c0_5] : memref<1x128xf32, #tpu.memory_space<vmem>>, vector<1x128xf32>
    %6 = vector.broadcast %5 : vector<1x128xf32> to vector<8x128xf32>
    %7 = arith.addf %4, %6 : vector<8x128xf32>
    %8 = vector.extract_strided_slice %7 {offsets = [0, 0], sizes = [8, 32], strides = [1, 1]} : vector<8x128xf32> to vector<8x32xf32>
    %c0_6 = arith.constant 0 : index
    %c0_7 = arith.constant 0 : index
    %9 = vector.load %arg4[%c0_6, %c0_7] : memref<8x32xf32, #tpu.memory_space<vmem>>, vector<8x32xf32>
    tpu.vector_store %arg4[%c0_6, %c0_7], %8 {strides = array<i32>} : memref<8x32xf32, #tpu.memory_space<vmem>>, vector<8x32xf32>,
    %10 = vector.extract_strided_slice %7 {offsets = [0, 32], sizes = [8, 32], strides = [1, 1]} : vector<8x128xf32> to vector<8x32xf32>
    %c0_8 = arith.constant 0 : index
    %c0_9 = arith.constant 0 : index
    %11 = vector.load %arg5[%c0_8, %c0_9] : memref<8x32xf32, #tpu.memory_space<vmem>>, vector<8x32xf32>
    tpu.vector_store %arg5[%c0_8, %c0_9], %10 {strides = array<i32>} : memref<8x32xf32, #tpu.memory_space<vmem>>, vector<8x32xf32>,
    %12 = vector.extract_strided_slice %7 {offsets = [0, 64], sizes = [8, 32], strides = [1, 1]} : vector<8x128xf32> to vector<8x32xf32>
    %c0_10 = arith.constant 0 : index
    %c0_11 = arith.constant 0 : index
    %13 = vector.load %arg6[%c0_10, %c0_11] : memref<8x32xf32, #tpu.memory_space<vmem>>, vector<8x32xf32>
    tpu.vector_store %arg6[%c0_10, %c0_11], %12 {strides = array<i32>} : memref<8x32xf32, #tpu.memory_space<vmem>>, vector<8x32xf32>,
    %14 = vector.extract_strided_slice %7 {offsets = [0, 96], sizes = [8, 32], strides = [1, 1]} : vector<8x128xf32> to vector<8x32xf32>
    %c0_12 = arith.constant 0 : index
    %c0_13 = arith.constant 0 : index
    %15 = vector.load %arg7[%c0_12, %c0_13] : memref<8x32xf32, #tpu.memory_space<vmem>>, vector<8x32xf32>
    tpu.vector_store %arg7[%c0_12, %c0_13], %14 {strides = array<i32>} : memref<8x32xf32, #tpu.memory_space<vmem>>, vector<8x32xf32>,
    return
  }
  func.func @transform_0(%arg0: i32) -> (i32, i32) {
    %c0_i32 = arith.constant 0 : i32
    %c0_i32_0 = arith.constant 0 : i32
    return %arg0, %c0_i32 : i32, i32
  }
  func.func @transform_1(%arg0: i32) -> (i32, i32) {
    %c0_i32 = arith.constant 0 : i32
    %c0_i32_0 = arith.constant 0 : i32
    %c0_i32_1 = arith.constant 0 : i32
    return %c0_i32, %c0_i32_0 : i32, i32
  }
  func.func @transform_2(%arg0: i32) -> (i32, i32) {
    %c0_i32 = arith.constant 0 : i32
    %c0_i32_0 = arith.constant 0 : i32
    %c0_i32_1 = arith.constant 0 : i32
    return %c0_i32, %c0_i32_0 : i32, i32
  }
  func.func @transform_3(%arg0: i32) -> (i32, i32) {
    %c0_i32 = arith.constant 0 : i32
    %c0_i32_0 = arith.constant 0 : i32
    return %arg0, %c0_i32 : i32, i32
  }
  func.func @transform_4(%arg0: i32) -> (i32, i32) {
    %c0_i32 = arith.constant 0 : i32
    %c0_i32_0 = arith.constant 0 : i32
    return %arg0, %c0_i32 : i32, i32
  }
  func.func @transform_5(%arg0: i32) -> (i32, i32) {
    %c0_i32 = arith.constant 0 : i32
    %c0_i32_0 = arith.constant 0 : i32
    return %arg0, %c0_i32 : i32, i32
  }
  func.func @transform_6(%arg0: i32) -> (i32, i32) {
    %c0_i32 = arith.constant 0 : i32
    %c0_i32_0 = arith.constant 0 : i32
    return %arg0, %c0_i32 : i32, i32
  }
}

</mosaic_0001>

<bundles_post_ra>
// kernel: tpu_custom_call.1
= control target key start
LH: loop header
LB: loop body
LE: loop exit
PB: predicated region body
PF: predicated region fallthrough
CT: control target
= control target key end

     0   :  { %12 = vsyncpa [#allocation3], 0  ;;  %s535_s0 = inlined_call_operand.hbm [shape: f32[8,32], index: 0, kind: input, shape index: {}]   ;;  %s536_s1 = inlined_call_operand.hbm [shape: f32[32,128], index: 1, kind: input, shape index: {}]   ;;  %s537_s2 = inlined_call_operand.vmem [shape: f32[1,128], index: 2, kind: input, shape index: {}]   ;;  %s538_s3 = inlined_call_operand.hbm [shape: f32[8,32], index: 3, kind: output, shape index: {0}]   ;;  %s539_s4 = inlined_call_operand.hbm [shape: f32[8,32], index: 4, kind: output, shape index: {1}]   ;;  %s540_s5 = inlined_call_operand.hbm [shape: f32[8,32], index: 5, kind: output, shape index: {2}]   ;;  %s541_s6 = inlined_call_operand.hbm [shape: f32[8,32], index: 6, kind: output, shape index: {3}]  }
   0x1   :  { %13 = vsyncpa [#allocation6], 0 }
   0x2   :  { %14 = vsyncpa [#allocation4], 0 }
   0x3   :  { %15 = vsyncpa [#allocation9], 0 }
   0x4   :  { %16 = vsyncpa [#allocation12], 0  ;;  %s385_s21 = smov [#allocation2]   ;;  %s386_s23 = smov [#allocation5]  }
   0x5   :  { %s23_s22 = sshll.u32 %s385_s21, 4  ;;  %s32_s24 = sshll.u32 %s386_s23, 4  ;;  %s24_s22 = int_to_ptr.vmem [resolvable:$true] %s23_s22  ;;  %s434_s24 = int_to_ptr.vmem [resolvable:$true] %s32_s24 }
   0x6   :  { %s243_s27 = scalar_lea.hbm %s535_s0, 128 }
   0x7   :  { %p244_p0 = scmp.ne.s32.totalorder %s535_s0, %s243_s27  ;;  %p247_p1 = scmp.lt.u32.totalorder %s243_s27, %s535_s0 }
   0x9   :  { %p249_p2 = pnand %p247_p1, %p244_p0 }
   0xb   :  { %252 = shalt.err (!%p249_p2)
}
   0xc   :  { %s253_s8 = scalar_lea.vmem %s24_s22, 128  ;;  %p258_p4 = scmp.lt.s32.totalorder %s24_s22, %s24_s22 }
   0xd   :  { %p254_p3 = scmp.ne.s32.totalorder %s24_s22, %s253_s8  ;;  %p259_p5 = scmp.lt.s32.totalorder %s253_s8, %s253_s8 }
   0xf   :  { %p260_p6 = por %p259_p5, %p258_p4 }
  0x11   :  { %p261_p7 = pnand %p260_p6, %p254_p3 }
  0x13   :  { %264 = shalt.err (!%p261_p7)
}
  0x14   :  { %26 = dma.hbm_to_vmem [thread:$0]  %s535_s0, 128, %s24_s22, [#allocation3]  }
  0x15   :  { %s265_s13 = scalar_lea.hbm %s536_s1, 512 }
  0x16   :  { %p266_p8 = scmp.ne.s32.totalorder %s536_s1, %s265_s13  ;;  %p269_p9 = scmp.lt.u32.totalorder %s265_s13, %s536_s1 }
  0x18   :  { %p271_p10 = pnand %p269_p9, %p266_p8 }
  0x1a   :  { %274 = shalt.err (!%p271_p10)
}
  0x1b   :  { %s275_s18 = scalar_lea.vmem %s434_s24, 512  ;;  %p280_p12 = scmp.lt.s32.totalorder %s434_s24, %s434_s24 }
  0x1c   :  { %p276_p11 = scmp.ne.s32.totalorder %s434_s24, %s275_s18  ;;  %p281_p13 = scmp.lt.s32.totalorder %s275_s18, %s275_s18 }
  0x1e   :  { %p282_p0 = por %p281_p13, %p280_p12 }
  0x20   :  { %p283_p1 = pnand %p282_p0, %p276_p11 }
  0x22   :  { %286 = shalt.err (!%p283_p1)
}
  0x23   :  { %s387_s0 = smov 128   ;;  %s388_s19 = smov 8  }
  0x24   :  { %38 = dma.hbm_to_vmem [thread:$0]  %s536_s1, 512, %s434_s24, [#allocation6], %s387_s0, %s387_s0, %s388_s19  }
  0x25   :  { %375 = dma.done.wait [#allocation3], 128  }
  0x26   :  { %376 = vsyncadd [#allocation3], 4294967168 }
  0x27   :  { %377 = dma.done.wait [#allocation6], 512  }
  0x28   :  { %378 = vsyncadd [#allocation6], 4294966784  ;;  %v389_v0 = vmov 0.0|0.0   ;;  %vm390_vm0 = vmmov 0   ;;  %v391_v1 = vmov 0.0   ;;  %v49_v2 = vld [vmem:[#allocation5] sm:$0xff] }
  0x29   :  { %223 = vmatprep.subr.bf16.mxu0 %v389_v0  ;;  %220 = vmatprep.mubr.msk.f32.mxu0 %vm390_vm0, %v391_v1  ;;  %v50_v3 = vld [vmem:[#allocation5 + $0x8] sm:$0xff]  ;;  %v51_v4 = vld [vmem:[#allocation5 + $0x10] sm:$0xff]  ;;  %v52_v6 = vld [vmem:[#allocation5 + $0x18] sm:$0xff]  ;;  %vm60_vm1 = vcmask 261120   ;;  %s392_s23 = smov [#allocation7]   ;;  %s393_s25 = smov 32  }
  0x2a   :  { %v224_v5 = vpack.c.bf16 %v50_v3, %v49_v2  ;;  %v227_v7 = vpack.c.bf16 %v52_v6, %v51_v4  ;;  %v47_v8 = vld [vmem:[#allocation2] sm:$0xff]  ;;  %s154_s24 = sshll.u32 %s392_s23, 4  ;;  %s394_s26 = smov 96   ;;  %s155_s24 = int_to_ptr.vmem [resolvable:$true] %s154_s24 }
  0x2b   :  { %v48_v9 = vmax.f32 %v47_v8, 0.0  ;;  %v205_v10 = vld [vmem:[%s537_s2] ss:$0 sm:$0xff]  ;;  %s287_s27 = scalar_lea.vmem %s155_s24, 128  ;;  %p292_p3 = scmp.lt.s32.totalorder %s155_s24, %s155_s24 }
  0x2c   :  { %225 = vmatpush3.bf16.msra.mxu0 %v224_v5  ;;  %p288_p2 = scmp.ne.s32.totalorder %s155_s24, %s287_s27  ;;  %p293_p4 = scmp.lt.s32.totalorder %s287_s27, %s287_s27 }
  0x2d   :  { %226 = vmatprep.subr.bf16.mxu0 %v389_v0 }
  0x2e   :  { %p294_p5 = por %p293_p4, %p292_p3 }
  0x30   :  { %228 = vmatpush3.bf16.msra.mxu0 %v227_v7  ;;  %p295_p6 = pnand %p294_p5, %p288_p2 }
  0x33   :  { %221 = vmatmul.mubr.msk.f32.vlgmr.msra.gmra.mrb[0].mxu0 %vm60_vm1, %v48_v9 }
 0x106   :  { %v130_v11 = vpop.f32.mrb[0].mxu0 }
 0x107   :  { %v131_v12 = vadd.f32 %v205_v10, %v130_v11  ;;  %v222_v13 = vpop.f32.mrb[1].mxu0 }
 0x109   :  { %134 = vst.msk [vmem:[#allocation7] sm:$0xff] %vm60_vm1, %v131_v12  ;;  %144 = vrot.lane.b32.xlu1 %v131_v12, %s393_s25  ;;  %136 = vrot.lane.b32.xlu0 %v131_v12, %s394_s26 }
 0x10a   :  { %298 = shalt.err (!%p295_p6)
}
 0x10b   :  { %s299_s29 = scalar_lea.hbm %s538_s3, 128 }
 0x10c   :  { %p300_p7 = scmp.ne.s32.totalorder %s538_s3, %s299_s29  ;;  %p303_p8 = scmp.lt.u32.totalorder %s299_s29, %s538_s3 }
 0x10e   :  { %p305_p9 = pnand %p303_p8, %p300_p7 }
 0x110   :  { %308 = shalt.err (!%p305_p9)
}
 0x111   :  { %157 = dma.vmem_to_hbm [thread:$0]  %s155_s24, 128, %s538_s3, [#allocation4]  }
 0x112   :  { %s395_s12 = smov 64   ;;  %s396_s13 = smov [#allocation8]  }
 0x113   :  { %140 = vrot.lane.b32.xlu0 %v131_v12, %s395_s12  ;;  %s164_s14 = sshll.u32 %s396_s13, 4  ;;  %s397_s15 = smov [#allocation11]   ;;  %s165_s14 = int_to_ptr.vmem [resolvable:$true] %s164_s14 }
 0x114   :  { %s184_s16 = sshll.u32 %s397_s15, 4  ;;  %s398_s17 = smov [#allocation10]   ;;  %s482_s16 = int_to_ptr.vmem [resolvable:$true] %s184_s16 }
 0x115   :  { %s174_s18 = sshll.u32 %s398_s17, 4  ;;  %s309_s3 = scalar_lea.vmem %s165_s14, 128  ;;  %s486_s18 = int_to_ptr.vmem [resolvable:$true] %s174_s18 }
 0x116   :  { %p310_p10 = scmp.ne.s32.totalorder %s165_s14, %s309_s3  ;;  %p314_p11 = scmp.lt.s32.totalorder %s165_s14, %s165_s14 }
 0x117   :  { %p315_p12 = scmp.lt.s32.totalorder %s309_s3, %s309_s3 }
 0x119   :  { %p316_p13 = por %p315_p12, %p314_p11 }
 0x11b   :  { %p317_p0 = pnand %p316_p13, %p310_p10 }
 0x17b   :  { %v145_v14 = vpop.permute.xlu1 %144  ;;  %v137_v15 = vpop.permute.xlu0 %136 }
 0x17c   :  { %147 = vst.msk [vmem:[#allocation11] sm:$0xff] %vm60_vm1, %v145_v14  ;;  %139 = vst.msk [vmem:[#allocation8] sm:$0xff] %vm60_vm1, %v137_v15 }
 0x17d   :  { %320 = shalt.err (!%p317_p0)
}
 0x17e   :  { %s321_s20 = scalar_lea.hbm %s539_s4, 128 }
 0x17f   :  { %p322_p1 = scmp.ne.s32.totalorder %s539_s4, %s321_s20  ;;  %p325_p2 = scmp.lt.u32.totalorder %s321_s20, %s539_s4 }
 0x181   :  { %p327_p3 = pnand %p325_p2, %p322_p1 }
 0x183   :  { %330 = shalt.err (!%p327_p3)
}
 0x184   :  { %167 = dma.vmem_to_hbm [thread:$0]  %s165_s14, 128, %s539_s4, [#allocation9]  }
 0x185   :  { %s331_s26 = scalar_lea.vmem %s482_s16, 128  ;;  %p336_p5 = scmp.lt.s32.totalorder %s482_s16, %s482_s16 }
 0x186   :  { %p332_p4 = scmp.ne.s32.totalorder %s482_s16, %s331_s26  ;;  %p337_p6 = scmp.lt.s32.totalorder %s331_s26, %s331_s26 }
 0x188   :  { %p338_p7 = por %p337_p6, %p336_p5 }
 0x18a   :  { %p339_p8 = pnand %p338_p7, %p332_p4 }
 0x18c   :  { %342 = shalt.err (!%p339_p8)
}
 0x18d   :  { %s343_s28 = scalar_lea.hbm %s541_s6, 128 }
 0x18e   :  { %p344_p9 = scmp.ne.s32.totalorder %s541_s6, %s343_s28  ;;  %p347_p10 = scmp.lt.u32.totalorder %s343_s28, %s541_s6 }
 0x190   :  { %p349_p11 = pnand %p347_p10, %p344_p9 }
 0x192   :  { %352 = shalt.err (!%p349_p11)
}
 0x193   :  { %187 = dma.vmem_to_hbm [thread:$0]  %s482_s16, 128, %s541_s6, [#allocation12]   ;;  %v141_v16 = vpop.permute.xlu0 %140 }
 0x194   :  { %143 = vst.msk [vmem:[#allocation10] sm:$0xff] %vm60_vm1, %v141_v16  ;;  %s353_s10 = scalar_lea.vmem %s486_s18, 128  ;;  %p358_p13 = scmp.lt.s32.totalorder %s486_s18, %s486_s18 }
 0x195   :  { %p354_p12 = scmp.ne.s32.totalorder %s486_s18, %s353_s10  ;;  %p359_p0 = scmp.lt.s32.totalorder %s353_s10, %s353_s10 }
 0x197   :  { %p360_p1 = por %p359_p0, %p358_p13 }
 0x199   :  { %p361_p2 = pnand %p360_p1, %p354_p12 }
 0x19b   :  { %364 = shalt.err (!%p361_p2)
}
 0x19c   :  { %s365_s13 = scalar_lea.hbm %s540_s5, 128 }
 0x19d   :  { %p366_p3 = scmp.ne.s32.totalorder %s540_s5, %s365_s13  ;;  %p369_p4 = scmp.lt.u32.totalorder %s365_s13, %s540_s5 }
 0x19f   :  { %p371_p5 = pnand %p369_p4, %p366_p3 }
 0x1a1   :  { %374 = shalt.err (!%p371_p5)
}
 0x1a2   :  { %177 = dma.vmem_to_hbm [thread:$0]  %s486_s18, 128, %s540_s5, [#allocation9]  }
 0x1a3   :  { %379 = dma.done.wait [#allocation4], 128  }
 0x1a4   :  { %380 = vsyncadd [#allocation4], 4294967168 }
 0x1a5   :  { %381 = dma.done.wait [#allocation9], 256  }
 0x1a6   :  { %382 = vsyncadd [#allocation9], 4294967040 }
 0x1a7   :  { %383 = dma.done.wait [#allocation12], 128  }
 0x1a8   :  { %384 = vsyncadd [#allocation12], 4294967168 }
 0x1a9   :  { %200 = vsyncpa [#allocation3], 1 }
 0x1aa   :  { %201 = vsyncpa [#allocation6], 1 }
 0x1ab   :  { %202 = vsyncpa [#allocation4], 1 }
 0x1ac   :  { %203 = vsyncpa [#allocation9], 1 }
 0x1ad   :  { %204 = vsyncpa [#allocation12], 1 }

</bundles_post_ra>
